<compile_context>
chip_gen: v7x
topology: tpu7x:2x2x1
jax: 0.10.0
libtpu: 0.0.40
codegen_flags: <defaults>
</compile_context>

<pallas_src>
import jax
import jax.numpy as jnp
from jax.experimental import pallas as pl
from jax.experimental.pallas import tpu as pltpu


def _round_up(x, m):
    return ((x + m - 1) // m) * m


def _hw_config():
    """Return (tm_target, tn_target, tk_target, vmem_capacity, multi_core)."""
    vmem_cap = 64 * 1024 * 1024
    try:
        info = pltpu.get_tpu_info()
        vmem_cap = int(getattr(info, "vmem_capacity_bytes", vmem_cap))
    except Exception:
        pass
    kind = ""
    try:
        kind = jax.devices()[0].device_kind.lower()
    except Exception:
        pass
    multi_core = "v7" in kind
    if multi_core or vmem_cap < 100 * 1024 * 1024:
        # v7x: 64 MiB VMEM per TC, ridge ~311 flops/byte -> 512 tiles suffice.
        tm_t = tn_t = 512
    else:
        # v5e / v6e: 128 MiB physical VMEM; 1024 tiles cross the v6e ridge.
        tm_t = tn_t = 1024
    tk_t = 512
    return tm_t, tn_t, tk_t, vmem_cap, multi_core


def _plan_dim(dim, target, align):
    """Pad `dim` to a multiple of `align`; choose a tile (multiple of `align`,
    <= target) that divides the padded dim with minimal over-padding.
    Returns (padded_dim, tile)."""
    target = max(int(target), align)
    padded = _round_up(dim, align)
    if padded <= target:
        return padded, padded
    n_tiles = -(-padded // target)                 # ceil
    tile = _round_up(-(-padded // n_tiles), align)  # ceil, then align up
    return tile * n_tiles, tile


def _linear_kernel(x_ref, w_ref, b_ref, o_ref, acc_ref):
    # Tiled y = X @ W + b with K as the innermost ("arbitrary") grid axis.
    k = pl.program_id(2)

    @pl.when(k == 0)
    def _():
        acc_ref[...] = jnp.zeros_like(acc_ref)

    # Operands are cast to bf16 in VMEM (no-op if already bf16) so the MXU
    # stays on its fast path; accumulation is f32.
    acc_ref[...] += jnp.dot(
        x_ref[...].astype(jnp.bfloat16),
        w_ref[...].astype(jnp.bfloat16),
        preferred_element_type=jnp.float32,
    )

    # Bias is added ONLY in the finalize branch (not per K step).
    @pl.when(k == pl.num_programs(2) - 1)
    def _():
        o_ref[...] = (
            acc_ref[...] + b_ref[...].astype(jnp.float32)
        ).astype(o_ref.dtype)


def _run_padded(x_pad, w_pad, b2d, tm, tn, tk, out_dtype, vmem_cap):
    """pallas_call on pre-padded operands. x_pad:(Mp,Kp) f32|bf16,
    w_pad:(Kp,Np) bf16, b2d:(1,Np) f32."""
    Mp, Kp = x_pad.shape
    Kp2, Np = w_pad.shape
    assert Kp == Kp2 and b2d.shape == (1, Np)
    grid = (Mp // tm, Np // tn, Kp // tk)

    x_item = jnp.dtype(x_pad.dtype).itemsize
    out_item = jnp.dtype(out_dtype).itemsize
    vmem_bytes = (
        2 * tm * tk * x_item      # X tiles, double-buffered
        + 2 * tk * tn * 2         # W tiles (bf16), double-buffered
        + 2 * tn * 4              # bias tile (f32), double-buffered
        + 2 * tm * tn * out_item  # output tile, double-buffered
        + tm * tn * 4             # f32 accumulator scratch
    )
    # ~25% headroom under physical VMEM; generous 2x margin over the estimate.
    vmem_limit = int(min(0.75 * vmem_cap,
                         max(2 * vmem_bytes, 8 * 1024 * 1024)))

    return pl.pallas_call(
        _linear_kernel,
        out_shape=jax.ShapeDtypeStruct((Mp, Np), out_dtype),
        grid=grid,
        in_specs=[
            pl.BlockSpec((tm, tk), lambda i, j, k: (i, k)),
            pl.BlockSpec((tk, tn), lambda i, j, k: (k, j)),
            pl.BlockSpec((1, tn), lambda i, j, k: (0, j)),
        ],
        out_specs=pl.BlockSpec((tm, tn), lambda i, j, k: (i, j)),
        scratch_shapes=[pltpu.VMEM((tm, tn), jnp.float32)],
        compiler_params=pltpu.CompilerParams(
            dimension_semantics=("parallel", "parallel", "arbitrary"),
            vmem_limit_bytes=vmem_limit,
        ),
    )(x_pad, w_pad, b2d)


def _maybe_split_for_two_cores(Mp, tm, Np, tn, multi_core):
    """Guarantee >=2 parallel grid tiles on multi-TC chips (v7x)."""
    if multi_core and (Mp // tm) * (Np // tn) == 1:
        if Mp >= 32 and Mp % 32 == 0:
            tm = Mp // 2
        elif Np >= 256 and Np % 256 == 0:
            tn = Np // 2
    return tm, tn


def linear_pallas(x, w, b, *, force_pallas=False):
    """y = x @ w + b via a tiled Pallas TPU matmul.

    x: (B, K) float32;  w: (K, N) float32 (transpose of torch Linear weight);
    b: (N,) float32.  Returns (B, N) in x.dtype (bf16 operands, f32 acc).
    """
    B, K = x.shape
    K2, N = w.shape
    assert K == K2 and b.shape == (N,)
    out_dtype = x.dtype

    tm_t, tn_t, tk_t, vmem_cap, multi_core = _hw_config()
    Kp, tk = _plan_dim(K, tk_t, 128)
    Np, tn = _plan_dim(N, tn_t, 128)
    Mp, tm = _plan_dim(B, tm_t, 16)

    if (not force_pallas
            and Mp // tm == 1 and Np // tn == 1 and Kp // tk == 1):
        # Tiny single-tile problem: padding + kernel dispatch dominates; XLA's
        # fused dot is strictly faster (same bf16-operand numerics).
        y = jnp.dot(x.astype(jnp.bfloat16), w.astype(jnp.bfloat16),
                    preferred_element_type=jnp.float32) + b.astype(jnp.float32)
        return y.astype(out_dtype)

    tm, tn = _maybe_split_for_two_cores(Mp, tm, Np, tn, multi_core)

    # X: pre-cast to bf16 only if it is re-read across >=3 N tiles; otherwise
    # pass f32 and cast in-kernel (avoids an extra HBM read+write pass).
    x_in = x.astype(jnp.bfloat16) if (Np // tn >= 3) else x
    if (Mp, Kp) != (B, K):
        x_in = jnp.pad(x_in, ((0, Mp - B), (0, Kp - K)))
    w16 = w.astype(jnp.bfloat16)
    if (Kp, Np) != (K, N):
        w16 = jnp.pad(w16, ((0, Kp - K), (0, Np - N)))
    b32 = b.astype(jnp.float32)
    if Np != N:
        b32 = jnp.pad(b32, (0, Np - N))

    out = _run_padded(x_in, w16, b32.reshape(1, Np), tm, tn, tk,
                      out_dtype, vmem_cap)
    return out[:B, :N]


class PallasModule:
    """JAX/Pallas analogue of the d2l `Module` base class.

    forward(X) = self.net(X); `net` is a deterministic Linear layer whose
    matmul + bias runs inside the tiled Pallas kernel above.  The weight/bias
    bf16 cast + padding is cached at construction (weight-stationary)."""

    def __init__(self, in_features=32, out_features=64,
                 plot_train_per_epoch=2, plot_valid_per_epoch=1,
                 force_pallas=False):
        self.plot_train_per_epoch = plot_train_per_epoch
        self.plot_valid_per_epoch = plot_valid_per_epoch
        self.in_features = in_features
        self.out_features = out_features
        self.force_pallas = force_pallas

        # Deterministic parameter init (synthetic, not a checkpoint load).
        kw, kb = jax.random.split(jax.random.PRNGKey(42))
        scale = 1.0 / jnp.sqrt(jnp.float32(in_features))
        self.weight = jax.random.uniform(
            kw, (in_features, out_features), jnp.float32, -scale, scale)
        self.bias = jax.random.uniform(
            kb, (out_features,), jnp.float32, -scale, scale)

        # Hoist the per-call W/b cast + pad out of the forward path.
        self._hw = _hw_config()
        tm_t, tn_t, tk_t, vmem_cap, multi_core = self._hw
        Kp, tk = _plan_dim(in_features, tk_t, 128)
        Np, tn = _plan_dim(out_features, tn_t, 128)
        self._nk = (Kp, tk, Np, tn)
        w16 = self.weight.astype(jnp.bfloat16)
        if (Kp, Np) != (in_features, out_features):
            w16 = jnp.pad(w16, ((0, Kp - in_features), (0, Np - out_features)))
        b32 = self.bias.astype(jnp.float32)
        if Np != out_features:
            b32 = jnp.pad(b32, (0, Np - out_features))
        self._w16 = w16
        self._b2d = b32.reshape(1, Np)

        self.net = self._net

    def _net(self, X):
        B, K = X.shape
        assert K == self.in_features
        tm_t, tn_t, tk_t, vmem_cap, multi_core = self._hw
        Kp, tk, Np, tn = self._nk
        Mp, tm = _plan_dim(B, tm_t, 16)

        if (not self.force_pallas
                and Mp // tm == 1 and Np // tn == 1 and Kp // tk == 1):
            y = jnp.dot(X.astype(jnp.bfloat16),
                        self.weight.astype(jnp.bfloat16),
                        preferred_element_type=jnp.float32) + self.bias
            return y.astype(X.dtype)

        tm, tn = _maybe_split_for_two_cores(Mp, tm, Np, tn, multi_core)

        x_in = X.astype(jnp.bfloat16) if (Np // tn >= 3) else X
        if (Mp, Kp) != (B, K):
            x_in = jnp.pad(x_in, ((0, Mp - B), (0, Kp - K)))
        out = _run_padded(x_in, self._w16, self._b2d, tm, tn, tk,
                          X.dtype, vmem_cap)
        return out[:B, :self.out_features]

    def forward(self, X):
        assert hasattr(self, "net"), "Neural network is defined"
        return self.net(X)

    __call__ = forward


def _bf16_reference(x, w, b):
    # Reference with the same bf16-operand / f32-accumulate numerics.
    return jnp.dot(x.astype(jnp.bfloat16), w.astype(jnp.bfloat16),
                   preferred_element_type=jnp.float32) + b


if __name__ == "__main__":
    # --- small-shape test consistent with the module defaults -------------
    batch, in_features, out_features = 8, 32, 64
    X = jax.random.normal(jax.random.PRNGKey(0), (batch, in_features),
                          dtype=jnp.float32)

    # Force the Pallas path so the kernel itself is exercised at toy shapes.
    model = PallasModule(in_features=in_features, out_features=out_features,
                         force_pallas=True)
    y = jax.block_until_ready(model(X))
    y_ref = _bf16_reference(X, model.weight, model.bias)
    assert y.shape == (batch, out_features)
    assert jnp.allclose(y, y_ref, atol=5e-3, rtol=5e-3)

    # Default (auto) path uses the small-shape jnp.dot bypass; same numerics.
    model_auto = PallasModule(in_features=in_features,
                              out_features=out_features)
    y_auto = jax.block_until_ready(model_auto(X))
    assert jnp.allclose(y_auto, y_ref, atol=5e-3, rtol=5e-3)

    # --- multi-tile test: exercises K-accumulation + bias epilogue --------
    kx, kw2, kb2 = jax.random.split(jax.random.PRNGKey(1), 3)
    B2, K2, N2 = 256, 1024, 512
    X2 = jax.random.normal(kx, (B2, K2), dtype=jnp.float32)
    W2 = jax.random.normal(kw2, (K2, N2), dtype=jnp.float32) * 0.02
    b2 = jax.random.normal(kb2, (N2,), dtype=jnp.float32)
    y2 = jax.block_until_ready(linear_pallas(X2, W2, b2))
    assert y2.shape == (B2, N2)
    assert jnp.allclose(y2, _bf16_reference(X2, W2, b2), atol=5e-2, rtol=5e-2)

    # --- awkward-shape test: exercises the fixed tile/pad planning --------
    ka, kwa, kba = jax.random.split(jax.random.PRNGKey(2), 3)
    B3, K3, N3 = 300, 640, 384
    X3 = jax.random.normal(ka, (B3, K3), dtype=jnp.float32)
    W3 = jax.random.normal(kwa, (K3, N3), dtype=jnp.float32) * 0.02
    b3 = jax.random.normal(kba, (N3,), dtype=jnp.float32)
    y3 = jax.block_until_ready(linear_pallas(X3, W3, b3))
    assert y3.shape == (B3, N3)
    assert jnp.allclose(y3, _bf16_reference(X3, W3, b3), atol=5e-2, rtol=5e-2)

    print("KERNEL_OK")
</pallas_src>

<mosaic_0001>
module attributes {stable_mosaic.version = 11 : i64} {
  func.func @_linear_kernel(%arg0: i32, %arg1: i32, %arg2: i32, %arg3: memref<16x128xf32, #tpu.memory_space<vmem>>, %arg4: memref<128x128xbf16, #tpu.memory_space<vmem>>, %arg5: memref<1x128xf32, #tpu.memory_space<vmem>>, %arg6: memref<16x128xf32, #tpu.memory_space<vmem>>, %arg7: memref<16x128xf32, #tpu.memory_space<vmem>>) attributes {dimension_semantics = [#tpu.dimension_semantics<parallel>, #tpu.dimension_semantics<parallel>, #tpu.dimension_semantics<arbitrary>], iteration_bounds = array<i64: 1, 1, 1>, scalar_prefetch = 0 : i64, scratch_operands = 1 : i64, tpu.core_type = #tpu.core_type<tc>, window_params = [{transform_indices = @transform_0, window_bounds = array<i64: 16, 128>}, {transform_indices = @transform_1, window_bounds = array<i64: 128, 128>}, {transform_indices = @transform_2, window_bounds = array<i64: 1, 128>}, {transform_indices = @transform_3, window_bounds = array<i64: 16, 128>}]} {
    %c0_i32 = arith.constant 0 : i32
    %0 = arith.cmpi eq, %arg2, %c0_i32 : i32
    %1 = arith.extui %0 : i1 to i32
    %c0_i32_0 = arith.constant 0 : i32
    %2 = arith.cmpi ne, %1, %c0_i32_0 : i32
    scf.if %2 {
      %cst_10 = arith.constant 0.000000e+00 : f32
      %13 = vector.broadcast %cst_10 : f32 to vector<16x128xf32>
      %c0_11 = arith.constant 0 : index
      %c0_12 = arith.constant 0 : index
      %14 = vector.load %arg7[%c0_11, %c0_12] : memref<16x128xf32, #tpu.memory_space<vmem>>, vector<16x128xf32>
      tpu.vector_store %arg7[%c0_11, %c0_12], %13 {strides = array<i32>} : memref<16x128xf32, #tpu.memory_space<vmem>>, vector<16x128xf32>,
    } else {
    }
    %c0 = arith.constant 0 : index
    %c0_1 = arith.constant 0 : index
    %3 = vector.load %arg7[%c0, %c0_1] : memref<16x128xf32, #tpu.memory_space<vmem>>, vector<16x128xf32>
    %c0_2 = arith.constant 0 : index
    %c0_3 = arith.constant 0 : index
    %4 = vector.load %arg3[%c0_2, %c0_3] : memref<16x128xf32, #tpu.memory_space<vmem>>, vector<16x128xf32>
    %5 = arith.truncf %4 : vector<16x128xf32> to vector<16x128xbf16>
    %c0_4 = arith.constant 0 : index
    %c0_5 = arith.constant 0 : index
    %6 = vector.load %arg4[%c0_4, %c0_5] : memref<128x128xbf16, #tpu.memory_space<vmem>>, vector<128x128xbf16>
    %cst = arith.constant dense<0.000000e+00> : vector<16x128xf32>
    %7 = tpu.matmul %5, %6, %cst {dimension_numbers = #tpu.dot_dimension_numbers<[1], [0], [0], [1], [0, 0, 1, 1], [], []>} : vector<16x128xbf16>, vector<128x128xbf16>, vector<16x128xf32> -> vector<16x128xf32>
    %8 = arith.addf %3, %7 : vector<16x128xf32>
    %c0_6 = arith.constant 0 : index
    %c0_7 = arith.constant 0 : index
    %9 = vector.load %arg7[%c0_6, %c0_7] : memref<16x128xf32, #tpu.memory_space<vmem>>, vector<16x128xf32>
    tpu.vector_store %arg7[%c0_6, %c0_7], %8 {strides = array<i32>} : memref<16x128xf32, #tpu.memory_space<vmem>>, vector<16x128xf32>,
    %c0_i32_8 = arith.constant 0 : i32
    %10 = arith.cmpi eq, %arg2, %c0_i32_8 : i32
    %11 = arith.extui %10 : i1 to i32
    %c0_i32_9 = arith.constant 0 : i32
    %12 = arith.cmpi ne, %11, %c0_i32_9 : i32
    scf.if %12 {
      %c0_10 = arith.constant 0 : index
      %c0_11 = arith.constant 0 : index
      %13 = vector.load %arg7[%c0_10, %c0_11] : memref<16x128xf32, #tpu.memory_space<vmem>>, vector<16x128xf32>
      %c0_12 = arith.constant 0 : index
      %c0_13 = arith.constant 0 : index
      %14 = vector.load %arg5[%c0_12, %c0_13] : memref<1x128xf32, #tpu.memory_space<vmem>>, vector<1x128xf32>
      %15 = vector.broadcast %14 : vector<1x128xf32> to vector<16x128xf32>
      %16 = arith.addf %13, %15 : vector<16x128xf32>
      %c0_14 = arith.constant 0 : index
      %c0_15 = arith.constant 0 : index
      %17 = vector.load %arg6[%c0_14, %c0_15] : memref<16x128xf32, #tpu.memory_space<vmem>>, vector<16x128xf32>
      tpu.vector_store %arg6[%c0_14, %c0_15], %16 {strides = array<i32>} : memref<16x128xf32, #tpu.memory_space<vmem>>, vector<16x128xf32>,
    } else {
    }
    return
  }
  func.func @transform_0(%arg0: i32, %arg1: i32, %arg2: i32) -> (i32, i32) {
    %c0_i32 = arith.constant 0 : i32
    return %arg0, %arg2 : i32, i32
  }
  func.func @transform_1(%arg0: i32, %arg1: i32, %arg2: i32) -> (i32, i32) {
    %c0_i32 = arith.constant 0 : i32
    return %arg2, %arg1 : i32, i32
  }
  func.func @transform_2(%arg0: i32, %arg1: i32, %arg2: i32) -> (i32, i32) {
    %c0_i32 = arith.constant 0 : i32
    %c0_i32_0 = arith.constant 0 : i32
    return %c0_i32, %arg1 : i32, i32
  }
  func.func @transform_3(%arg0: i32, %arg1: i32, %arg2: i32) -> (i32, i32) {
    %c0_i32 = arith.constant 0 : i32
    return %arg0, %arg1 : i32, i32
  }
}

</mosaic_0001>

<bundles_post_ra>
// kernel: tpu_custom_call.1
= control target key start
LH: loop header
LB: loop body
LE: loop exit
PB: predicated region body
PF: predicated region fallthrough
CT: control target
= control target key end

     0   :  { %8 = vsyncpa [#allocation4], 0  ;;  %s399_s0 = inlined_call_operand.hbm [shape: f32[16,128], index: 0, kind: input, shape index: {}]   ;;  %s400_s1 = inlined_call_operand.hbm [shape: bf16[128,128], index: 1, kind: input, shape index: {}]   ;;  %s401_s2 = inlined_call_operand.vmem [shape: f32[1,128], index: 2, kind: input, shape index: {}]   ;;  %s402_s3 = inlined_call_operand.hbm [shape: f32[16,128], index: 3, kind: output, shape index: {}]  }
   0x1   :  { %9 = vsyncpa [#allocation7], 0 }
   0x2   :  { %10 = vsyncpa [#allocation5], 0  ;;  %s325_s12 = smov [#allocation3]   ;;  %s253_s16 = scalar_lea.hbm %s399_s0, 256 }
   0x3   :  { %s16_s13 = sshll.u32 %s325_s12, 4  ;;  %p254_p0 = scmp.ne.s32.totalorder %s399_s0, %s253_s16  ;;  %s17_s13 = int_to_ptr.vmem [resolvable:$true] %s16_s13 }
   0x4   :  { %p257_p1 = scmp.lt.u32.totalorder %s253_s16, %s399_s0 }
   0x6   :  { %p259_p2 = pnand %p257_p1, %p254_p0 }
   0x8   :  { %262 = shalt.err (!%p259_p2)
}
   0x9   :  { %s263_s21 = scalar_lea.vmem %s17_s13, 256  ;;  %p268_p4 = scmp.lt.s32.totalorder %s17_s13, %s17_s13 }
   0xa   :  { %p264_p3 = scmp.ne.s32.totalorder %s17_s13, %s263_s21  ;;  %p269_p5 = scmp.lt.s32.totalorder %s263_s21, %s263_s21 }
   0xc   :  { %p270_p6 = por %p269_p5, %p268_p4 }
   0xe   :  { %p271_p7 = pnand %p270_p6, %p264_p3 }
  0x10   :  { %274 = shalt.err (!%p271_p7)
}
  0x11   :  { %s326_s22 = smov 128   ;;  %s327_s23 = smov 8  }
  0x12   :  { %22 = dma.hbm_to_vmem [thread:$0]  %s399_s0, 256, %s17_s13, [#allocation4], %s326_s22, %s326_s22, %s327_s23  }
  0x13   :  { %s328_s26 = smov [#allocation6]   ;;  %s275_s30 = scalar_lea.hbm %s400_s1, 1024 }
  0x14   :  { %s28_s27 = sshll.u32 %s328_s26, 4  ;;  %p276_p8 = scmp.ne.s32.totalorder %s400_s1, %s275_s30  ;;  %s29_s27 = int_to_ptr.vmem [resolvable:$true] %s28_s27 }
  0x15   :  { %p279_p9 = scmp.lt.u32.totalorder %s275_s30, %s400_s1 }
  0x17   :  { %p281_p10 = pnand %p279_p9, %p276_p8 }
  0x19   :  { %284 = shalt.err (!%p281_p10)
}
  0x1a   :  { %s285_s8 = scalar_lea.vmem %s29_s27, 1024  ;;  %p290_p12 = scmp.lt.s32.totalorder %s29_s27, %s29_s27 }
  0x1b   :  { %p286_p11 = scmp.ne.s32.totalorder %s29_s27, %s285_s8  ;;  %p291_p13 = scmp.lt.s32.totalorder %s285_s8, %s285_s8 }
  0x1d   :  { %p292_p0 = por %p291_p13, %p290_p12 }
  0x1f   :  { %p293_p1 = pnand %p292_p0, %p286_p11 }
  0x21   :  { %296 = shalt.err (!%p293_p1)
}
  0x22   :  { %s329_s0 = smov 64   ;;  %s330_s9 = smov 4  }
  0x23   :  { %34 = dma.hbm_to_vmem [thread:$0]  %s400_s1, 1024, %s29_s27, [#allocation7], %s329_s0, %s329_s0, %s330_s9  }
  0x24   :  { %319 = dma.done.wait [#allocation4], 256  }
  0x25   :  { %320 = vsyncadd [#allocation4], 4294967040 }
  0x26   :  { %321 = dma.done.wait [#allocation7], 1024  }
  0x27   :  { %322 = vsyncadd [#allocation7], 4294966272  ;;  %v331_v0 = vmov 0.0   ;;  %vm332_vm0 = vmmov 0   ;;  %v245_v1 = vld [vmem:[#allocation6] sm:$0xff]   ;;  %v246_v2 = vld [vmem:[#allocation6 + $0x8] sm:$0xff]  }
  0x28   :  { %216 = vmatprep.subr.bf16.mxu0 %v331_v0  ;;  %232 = vmatprep.mubr.msk.bf16.mxu0 %vm332_vm0, %v331_v0  ;;  %v247_v3 = vld [vmem:[#allocation6 + $0x10] sm:$0xff]   ;;  %v248_v4 = vld [vmem:[#allocation6 + $0x18] sm:$0xff]   ;;  %v249_v5 = vld [vmem:[#allocation6 + $0x20] sm:$0xff]   ;;  %s333_s13 = smov [#allocation8]  }
  0x29   :  { %217 = vmatpush3.bf16.msra.mxu0 %v245_v1  ;;  %v250_v6 = vld [vmem:[#allocation6 + $0x28] sm:$0xff]   ;;  %v251_v7 = vld [vmem:[#allocation6 + $0x30] sm:$0xff]   ;;  %v252_v8 = vld [vmem:[#allocation6 + $0x38] sm:$0xff]   ;;  %s185_s14 = sshll.u32 %s333_s13, 4  ;;  %s186_s14 = int_to_ptr.vmem [resolvable:$true] %s185_s14 }
  0x2a   :  { %218 = vmatprep.subr.bf16.mxu0 %v331_v0  ;;  %v52_v9 = vld [vmem:[#allocation3] sm:$0xff]  ;;  %v53_v10 = vld [vmem:[#allocation3 + $0x8] sm:$0xff]  ;;  %s297_s15 = scalar_lea.vmem %s186_s14, 256  ;;  %p302_p3 = scmp.lt.s32.totalorder %s186_s14, %s186_s14 }
  0x2b   :  { %v54_v11 = vpack.c.bf16 %v53_v10, %v52_v9  ;;  %v206_v12 = vld [vmem:[%s401_s2] ss:$0 sm:$0xff]  ;;  %p298_p2 = scmp.ne.s32.totalorder %s186_s14, %s297_s15  ;;  %p303_p4 = scmp.lt.s32.totalorder %s297_s15, %s297_s15 }
  0x2d   :  { %219 = vmatpush3.bf16.msra.mxu0 %v246_v2  ;;  %p304_p5 = por %p303_p4, %p302_p3 }
  0x2e   :  { %220 = vmatprep.subr.bf16.mxu0 %v331_v0 }
  0x2f   :  { %p305_p6 = pnand %p304_p5, %p298_p2 }
  0x31   :  { %221 = vmatpush3.bf16.msra.mxu0 %v247_v3 }
  0x32   :  { %222 = vmatprep.subr.bf16.mxu0 %v331_v0 }
  0x35   :  { %223 = vmatpush3.bf16.msra.mxu0 %v248_v4 }
  0x36   :  { %224 = vmatprep.subr.bf16.mxu0 %v331_v0 }
  0x39   :  { %225 = vmatpush3.bf16.msra.mxu0 %v249_v5 }
  0x3a   :  { %226 = vmatprep.subr.bf16.mxu0 %v331_v0 }
  0x3d   :  { %227 = vmatpush3.bf16.msra.mxu0 %v250_v6 }
  0x3e   :  { %228 = vmatprep.subr.bf16.mxu0 %v331_v0 }
  0x41   :  { %229 = vmatpush3.bf16.msra.mxu0 %v251_v7 }
  0x42   :  { %230 = vmatprep.subr.bf16.mxu0 %v331_v0 }
  0x45   :  { %231 = vmatpush3.bf16.msra.mxu0 %v252_v8 }
  0x48   :  { %233 = vmatmul.mubr.bf16.vlgmr.msra.gmra.mrb[0].mxu0 %v54_v11 }
 0x11b   :  { %v153_v13 = vpop.f32.mrb[0].mxu0 }
 0x11c   :  { %v176_v14 = vadd.f32 %v206_v12, %v153_v13  ;;  %v234_v15 = vpop.f32.mrb[1].mxu0 }
 0x11d   :  { %v156_v16 = vpop.f32.mrb[2].mxu0 }
 0x11e   :  { %178 = vst [vmem:[#allocation8] sm:$0xff] %v176_v14  ;;  %v177_v17 = vadd.f32 %v206_v12, %v156_v16  ;;  %v235_v18 = vpop.f32.mrb[3].mxu0 }
 0x120   :  { %179 = vst [vmem:[#allocation8 + $0x8] sm:$0xff] %v177_v17 }
 0x121   :  { %308 = shalt.err (!%p305_p6)
}
 0x122   :  { %s309_s17 = scalar_lea.hbm %s402_s3, 256 }
 0x123   :  { %p310_p7 = scmp.ne.s32.totalorder %s402_s3, %s309_s17  ;;  %p313_p8 = scmp.lt.u32.totalorder %s309_s17, %s402_s3 }
 0x125   :  { %p315_p9 = pnand %p313_p8, %p310_p7 }
 0x127   :  { %318 = shalt.err (!%p315_p9)
}
 0x128   :  { %191 = dma.vmem_to_hbm [thread:$0]  %s186_s14, 256, %s402_s3, [#allocation5], %s326_s22, %s326_s22, %s327_s23  }
 0x129   :  { %323 = dma.done.wait [#allocation5], 256  }
 0x12a   :  { %324 = vsyncadd [#allocation5], 4294967040 }
 0x12b   :  { %195 = vsyncpa [#allocation4], 1 }
 0x12c   :  { %196 = vsyncpa [#allocation7], 1 }
 0x12d   :  { %197 = vsyncpa [#allocation5], 1 }

</bundles_post_ra>
